<compile_context>
chip_gen: v5e
topology: v5e:2x2
jax: 0.10.0
libtpu: 0.0.40
codegen_flags: <defaults>
</compile_context>

<pallas_src>
import jax
import jax.numpy as jnp
from jax.experimental import pallas as pl
from jax.experimental.pallas import tpu as pltpu


def _round_up(x, m):
    return ((x + m - 1) // m) * m


def _decoder_kernel(ids_ref,                       # VMEM: (B, 1) int32 token ids
                    emb_ref,                       # VMEM: (Vp, Kp) f32 padded table
                    h_ref, c_ref,                  # VMEM: (1, B, H) f32
                    wcat_ref,                      # VMEM: (Kcat, 4H) = [W_ih^T;W_hh^T;0]
                    b_ref,                         # VMEM: (1, 4H) fused LSTM bias
                    fcw_ref, fcb_ref,              # VMEM: (H, Op), (1, Op) padded fc
                    pred_ref, h_out_ref, c_out_ref):
    B = ids_ref.shape[0]
    Vp, Kp = emb_ref.shape
    H = h_ref.shape[2]
    Kcat = wcat_ref.shape[0]

    # 1) Embedding gather as a one-hot MXU matmul (table resident in VMEM).
    #    Padded vocab rows are zero and never selected (ids < V), so exact.
    lane_v = jax.lax.broadcasted_iota(jnp.int32, (B, Vp), 1)
    one_hot = (lane_v == ids_ref[...]).astype(jnp.float32)                # (B, Vp)
    x = jnp.dot(one_hot, emb_ref[...], preferred_element_type=jnp.float32)  # (B, Kp)

    # 2) Fused input + recurrent matmul: gates = [x | h | 0] @ [Wih^T;Whh^T;0] + b
    h_prev = h_ref[0]                                                     # (B, H)
    c_prev = c_ref[0]                                                     # (B, H)
    h_tail = jnp.concatenate(
        [h_prev, jnp.zeros((B, Kcat - Kp - H), jnp.float32)], axis=1)     # (B, 128)
    xh = jnp.concatenate([x, h_tail], axis=1)                             # (B, Kcat)
    gates = (jnp.dot(xh, wcat_ref[...], preferred_element_type=jnp.float32)
             + b_ref[...])                                                # (B, 4H)

    # 3) Nonlinearities: ONE sigmoid pass over the full 4H == 128-lane vreg.
    #    PyTorch gate order: input, forget, cell(g), output.
    #    tanh on the g lanes via tanh(z) = 2*sigmoid(2z) - 1.
    lane = jax.lax.broadcasted_iota(jnp.int32, (B, 4 * H), 1)
    is_g = jnp.logical_and(lane >= 2 * H, lane < 3 * H)
    s = jax.nn.sigmoid(jnp.where(is_g, 2.0 * gates, gates))
    act = jnp.where(is_g, 2.0 * s - 1.0, s)

    i_g = act[:, 0 * H:1 * H]
    f_g = act[:, 1 * H:2 * H]
    g_g = act[:, 2 * H:3 * H]
    o_g = act[:, 3 * H:4 * H]

    c_new = f_g * c_prev + i_g * g_g
    h_new = o_g * jnp.tanh(c_new)

    # Back-to-back state stores.
    h_out_ref[0] = h_new
    c_out_ref[0] = c_new

    # 4) fc_out on a lane-dense (padded-to-128) output: unmasked vst.
    pred_ref[...] = (jnp.dot(h_new, fcw_ref[...], preferred_element_type=jnp.float32)
                     + fcb_ref[...])


def prepare_decoder_params(raw):
    """One-time prep: pad vocab/contraction/output dims, stack + transpose weights."""
    emb = raw["embedding"]                         # (V, K=300)
    V, K = emb.shape
    four_h, H = raw["w_hh"].shape[0], raw["w_hh"].shape[1]
    O = raw["fc_w"].shape[0]

    Kp = _round_up(K, 128)                         # 300 -> 384
    Vp = _round_up(V, 128)                         # 50  -> 128
    Kcat = Kp + _round_up(H, 128)                  # 384 + 128 = 512
    Op = _round_up(O, 128)                         # 50  -> 128

    emb_p = jnp.zeros((Vp, Kp), jnp.float32).at[:V, :K].set(emb)

    # Stacked gate weight: rows [0:K] = W_ih^T, rows [Kp:Kp+H] = W_hh^T, rest 0.
    wcat = jnp.zeros((Kcat, four_h), jnp.float32)
    wcat = wcat.at[:K, :].set(raw["w_ih"].T)
    wcat = wcat.at[Kp:Kp + H, :].set(raw["w_hh"].T)

    fcw_p = jnp.zeros((H, Op), jnp.float32).at[:, :O].set(raw["fc_w"].T)
    fcb_p = jnp.zeros((1, Op), jnp.float32).at[:, :O].set(raw["fc_b"])

    return {
        "emb_p": emb_p,                                    # (Vp, Kp)
        "wcat": wcat,                                      # (Kcat, 4H)
        "bias": (raw["b_ih"] + raw["b_hh"]).reshape(1, -1),  # (1, 4H)
        "fcw_p": fcw_p,                                    # (H, Op)
        "fcb_p": fcb_p,                                    # (1, Op)
        "out_dim": O,
        "hidden_dim": H,
    }


def decoder_forward(prepped, input_word, hidden, cell):
    """Mirrors Decoder.forward. input_word: (B,) ids; hidden/cell: (1, B, H)."""
    emb_p = prepped["emb_p"]
    wcat = prepped["wcat"]
    bias = prepped["bias"]
    fcw_p = prepped["fcw_p"]
    fcb_p = prepped["fcb_p"]
    out_dim = prepped["out_dim"]

    B = input_word.shape[0]
    Vp, Kp = emb_p.shape
    Kcat, four_h = wcat.shape
    H = prepped["hidden_dim"]
    Op = fcw_p.shape[1]

    ids2d = input_word.astype(jnp.int32).reshape(B, 1)

    pred_pad, h_out, c_out = pl.pallas_call(
        _decoder_kernel,
        out_shape=(jax.ShapeDtypeStruct((B, Op), jnp.float32),
                   jax.ShapeDtypeStruct((1, B, H), jnp.float32),
                   jax.ShapeDtypeStruct((1, B, H), jnp.float32)),
        grid_spec=pltpu.PrefetchScalarGridSpec(
            num_scalar_prefetch=0,
            grid=(1,),
            in_specs=[
                pl.BlockSpec((B, 1), lambda i: (0, 0)),           # token ids
                pl.BlockSpec((Vp, Kp), lambda i: (0, 0)),         # embedding table
                pl.BlockSpec((1, B, H), lambda i: (0, 0, 0)),     # hidden
                pl.BlockSpec((1, B, H), lambda i: (0, 0, 0)),     # cell
                pl.BlockSpec((Kcat, four_h), lambda i: (0, 0)),   # [W_ih^T;W_hh^T;0]
                pl.BlockSpec((1, four_h), lambda i: (0, 0)),      # fused LSTM bias
                pl.BlockSpec((H, Op), lambda i: (0, 0)),          # fc W^T (padded)
                pl.BlockSpec((1, Op), lambda i: (0, 0)),          # fc bias (padded)
            ],
            out_specs=[
                pl.BlockSpec((B, Op), lambda i: (0, 0)),          # pred (lane-dense)
                pl.BlockSpec((1, B, H), lambda i: (0, 0, 0)),     # hidden out
                pl.BlockSpec((1, B, H), lambda i: (0, 0, 0)),     # cell out
            ],
        ),
        compiler_params=pltpu.CompilerParams(
            dimension_semantics=("arbitrary",)),
    )(ids2d, emb_p, hidden, cell, wcat, bias, fcw_p, fcb_p)

    return pred_pad[:, :out_dim], h_out, c_out


def _decoder_ref(raw, input_word, hidden, cell):
    """Pure-JAX reference of the same forward (PyTorch Decoder semantics)."""
    x = raw["embedding"][input_word]               # (B, 300)
    h = hidden[0]
    c = cell[0]
    gates = x @ raw["w_ih"].T + h @ raw["w_hh"].T + raw["b_ih"] + raw["b_hh"]
    i, f, g, o = jnp.split(gates, 4, axis=1)
    i, f, g, o = jax.nn.sigmoid(i), jax.nn.sigmoid(f), jnp.tanh(g), jax.nn.sigmoid(o)
    c_new = f * c + i * g
    h_new = o * jnp.tanh(c_new)
    pred = h_new @ raw["fc_w"].T + raw["fc_b"]
    return pred, h_new[None], c_new[None]


if __name__ == "__main__":
    key = jax.random.PRNGKey(0)
    vocab_size, embed_dim = 50, 300                # embed dim fixed at 300 by the module
    hidden_dim, output_dim = 32, 50
    batch = 8

    ks = jax.random.split(key, 10)
    bound = 1.0 / (hidden_dim ** 0.5)
    raw = {
        "embedding": jax.random.normal(ks[0], (vocab_size, embed_dim), jnp.float32),
        "w_ih": jax.random.uniform(ks[1], (4 * hidden_dim, embed_dim), jnp.float32, -bound, bound),
        "w_hh": jax.random.uniform(ks[2], (4 * hidden_dim, hidden_dim), jnp.float32, -bound, bound),
        "b_ih": jax.random.uniform(ks[3], (4 * hidden_dim,), jnp.float32, -bound, bound),
        "b_hh": jax.random.uniform(ks[4], (4 * hidden_dim,), jnp.float32, -bound, bound),
        "fc_w": jax.random.uniform(ks[5], (output_dim, hidden_dim), jnp.float32, -bound, bound),
        "fc_b": jax.random.uniform(ks[6], (output_dim,), jnp.float32, -bound, bound),
    }
    input_word = jax.random.randint(ks[7], (batch,), 0, vocab_size, dtype=jnp.int32)
    hidden0 = 0.5 * jax.random.normal(ks[8], (1, batch, hidden_dim), jnp.float32)
    cell0 = 0.5 * jax.random.normal(ks[9], (1, batch, hidden_dim), jnp.float32)

    prepped = prepare_decoder_params(raw)          # one-time: pad/stack/transpose weights

    pred, h_out, c_out = decoder_forward(prepped, input_word, hidden0, cell0)
    jax.block_until_ready((pred, h_out, c_out))

    pred_ref, h_ref, c_ref = _decoder_ref(raw, input_word, hidden0, cell0)
    assert pred.shape == (batch, output_dim)
    assert h_out.shape == (1, batch, hidden_dim) and c_out.shape == (1, batch, hidden_dim)
    assert jnp.allclose(pred, pred_ref, atol=5e-5), "prediction mismatch"
    assert jnp.allclose(h_out, h_ref, atol=5e-5), "hidden mismatch"
    assert jnp.allclose(c_out, c_ref, atol=5e-5), "cell mismatch"

    print("KERNEL_OK")
</pallas_src>

<mosaic_0001>
module attributes {stable_mosaic.version = 11 : i64} {
  func.func @_decoder_kernel(%arg0: i32, %arg1: memref<8x1xi32, #tpu.memory_space<vmem>>, %arg2: memref<128x384xf32, #tpu.memory_space<vmem>>, %arg3: memref<1x8x32xf32, #tpu.memory_space<vmem>>, %arg4: memref<1x8x32xf32, #tpu.memory_space<vmem>>, %arg5: memref<512x128xf32, #tpu.memory_space<vmem>>, %arg6: memref<1x128xf32, #tpu.memory_space<vmem>>, %arg7: memref<32x128xf32, #tpu.memory_space<vmem>>, %arg8: memref<1x128xf32, #tpu.memory_space<vmem>>, %arg9: memref<8x128xf32, #tpu.memory_space<vmem>>, %arg10: memref<1x8x32xf32, #tpu.memory_space<vmem>>, %arg11: memref<1x8x32xf32, #tpu.memory_space<vmem>>) attributes {dimension_semantics = [#tpu.dimension_semantics<arbitrary>], iteration_bounds = array<i64: 1>, scalar_prefetch = 0 : i64, scratch_operands = 0 : i64, tpu.core_type = #tpu.core_type<tc>, window_params = [{pipeline_mode = #tpu.pipeline_mode<synchronous>, transform_indices = @transform_0, window_bounds = array<i64: 8, 1>}, {pipeline_mode = #tpu.pipeline_mode<synchronous>, transform_indices = @transform_1, window_bounds = array<i64: 128, 384>}, {pipeline_mode = #tpu.pipeline_mode<synchronous>, transform_indices = @transform_2, window_bounds = array<i64: 1, 8, 32>}, {pipeline_mode = #tpu.pipeline_mode<synchronous>, transform_indices = @transform_3, window_bounds = array<i64: 1, 8, 32>}, {pipeline_mode = #tpu.pipeline_mode<synchronous>, transform_indices = @transform_4, window_bounds = array<i64: 512, 128>}, {pipeline_mode = #tpu.pipeline_mode<synchronous>, transform_indices = @transform_5, window_bounds = array<i64: 1, 128>}, {pipeline_mode = #tpu.pipeline_mode<synchronous>, transform_indices = @transform_6, window_bounds = array<i64: 32, 128>}, {pipeline_mode = #tpu.pipeline_mode<synchronous>, transform_indices = @transform_7, window_bounds = array<i64: 1, 128>}, {pipeline_mode = #tpu.pipeline_mode<synchronous>, transform_indices = @transform_8, window_bounds = array<i64: 8, 128>}, {pipeline_mode = #tpu.pipeline_mode<synchronous>, transform_indices = @transform_9, window_bounds = array<i64: 1, 8, 32>}, {pipeline_mode = #tpu.pipeline_mode<synchronous>, transform_indices = @transform_10, window_bounds = array<i64: 1, 8, 32>}]} {
    %0 = tpu.iota {dimensions = array<i32: 1>} : vector<8x128xi32>
    %c0 = arith.constant 0 : index
    %c0_0 = arith.constant 0 : index
    %1 = vector.load %arg1[%c0, %c0_0] : memref<8x1xi32, #tpu.memory_space<vmem>>, vector<8x1xi32>
    %2 = vector.broadcast %1 : vector<8x1xi32> to vector<8x128xi32>
    %3 = arith.cmpi eq, %0, %2 : vector<8x128xi32>
    %4 = arith.extui %3 : vector<8x128xi1> to vector<8x128xi32>
    %5 = arith.sitofp %4 : vector<8x128xi32> to vector<8x128xf32>
    %c0_1 = arith.constant 0 : index
    %c0_2 = arith.constant 0 : index
    %6 = vector.load %arg2[%c0_1, %c0_2] : memref<128x384xf32, #tpu.memory_space<vmem>>, vector<128x384xf32>
    %cst = arith.constant dense<0.000000e+00> : vector<8x384xf32>
    %7 = tpu.matmul %5, %6, %cst {dimension_numbers = #tpu.dot_dimension_numbers<[1], [0], [0], [1], [0, 0, 1, 1], [], []>} : vector<8x128xf32>, vector<128x384xf32>, vector<8x384xf32> -> vector<8x384xf32>
    %c0_3 = arith.constant 0 : index
    %c0_4 = arith.constant 0 : index
    %c0_5 = arith.constant 0 : index
    %8 = vector.load %arg3[%c0_3, %c0_4, %c0_5] : memref<1x8x32xf32, #tpu.memory_space<vmem>>, vector<1x8x32xf32>
    %9 = vector.shape_cast %8 : vector<1x8x32xf32> to vector<8x32xf32>
    %c0_6 = arith.constant 0 : index
    %c0_7 = arith.constant 0 : index
    %c0_8 = arith.constant 0 : index
    %10 = vector.load %arg4[%c0_6, %c0_7, %c0_8] : memref<1x8x32xf32, #tpu.memory_space<vmem>>, vector<1x8x32xf32>
    %11 = vector.shape_cast %10 : vector<1x8x32xf32> to vector<8x32xf32>
    %cst_9 = arith.constant 0.000000e+00 : f32
    %12 = vector.broadcast %cst_9 : f32 to vector<8x96xf32>
    %13 = tpu.concatenate %9, %12 in 1 : vector<8x32xf32>, vector<8x96xf32> -> vector<8x128xf32>
    %14 = tpu.concatenate %7, %13 in 1 : vector<8x384xf32>, vector<8x128xf32> -> vector<8x512xf32>
    %c0_10 = arith.constant 0 : index
    %c0_11 = arith.constant 0 : index
    %15 = vector.load %arg5[%c0_10, %c0_11] : memref<512x128xf32, #tpu.memory_space<vmem>>, vector<512x128xf32>
    %cst_12 = arith.constant dense<0.000000e+00> : vector<8x128xf32>
    %16 = tpu.matmul %14, %15, %cst_12 {dimension_numbers = #tpu.dot_dimension_numbers<[1], [0], [0], [1], [0, 0, 1, 1], [], []>} : vector<8x512xf32>, vector<512x128xf32>, vector<8x128xf32> -> vector<8x128xf32>
    %c0_13 = arith.constant 0 : index
    %c0_14 = arith.constant 0 : index
    %17 = vector.load %arg6[%c0_13, %c0_14] : memref<1x128xf32, #tpu.memory_space<vmem>>, vector<1x128xf32>
    %18 = vector.broadcast %17 : vector<1x128xf32> to vector<8x128xf32>
    %19 = arith.addf %16, %18 : vector<8x128xf32>
    %20 = tpu.iota {dimensions = array<i32: 1>} : vector<8x128xi32>
    %c64_i32 = arith.constant 64 : i32
    %21 = vector.broadcast %c64_i32 : i32 to vector<8x128xi32>
    %22 = arith.cmpi sge, %20, %21 : vector<8x128xi32>
    %c96_i32 = arith.constant 96 : i32
    %23 = vector.broadcast %c96_i32 : i32 to vector<8x128xi32>
    %24 = arith.cmpi slt, %20, %23 : vector<8x128xi32>
    %25 = arith.andi %22, %24 : vector<8x128xi1>
    %cst_15 = arith.constant 2.000000e+00 : f32
    %26 = vector.broadcast %cst_15 : f32 to vector<8x128xf32>
    %27 = arith.mulf %26, %19 : vector<8x128xf32>
    %28 = arith.select %25, %27, %19 : vector<8x128xi1>, vector<8x128xf32>
    %29 = arith.negf %28 : vector<8x128xf32>
    %30 = math.exp %29 : vector<8x128xf32>
    %cst_16 = arith.constant 1.000000e+00 : f32
    %31 = vector.broadcast %cst_16 : f32 to vector<8x128xf32>
    %32 = arith.addf %31, %30 : vector<8x128xf32>
    %33 = arith.divf %31, %32 : vector<8x128xf32>
    %cst_17 = arith.constant 2.000000e+00 : f32
    %34 = vector.broadcast %cst_17 : f32 to vector<8x128xf32>
    %35 = arith.mulf %34, %33 : vector<8x128xf32>
    %cst_18 = arith.constant 1.000000e+00 : f32
    %36 = vector.broadcast %cst_18 : f32 to vector<8x128xf32>
    %37 = arith.subf %35, %36 : vector<8x128xf32>
    %38 = arith.select %25, %37, %33 : vector<8x128xi1>, vector<8x128xf32>
    %39 = vector.extract_strided_slice %38 {offsets = [0, 0], sizes = [8, 32], strides = [1, 1]} : vector<8x128xf32> to vector<8x32xf32>
    %40 = vector.extract_strided_slice %38 {offsets = [0, 32], sizes = [8, 32], strides = [1, 1]} : vector<8x128xf32> to vector<8x32xf32>
    %41 = vector.extract_strided_slice %38 {offsets = [0, 64], sizes = [8, 32], strides = [1, 1]} : vector<8x128xf32> to vector<8x32xf32>
    %42 = vector.extract_strided_slice %38 {offsets = [0, 96], sizes = [8, 32], strides = [1, 1]} : vector<8x128xf32> to vector<8x32xf32>
    %43 = arith.mulf %40, %11 : vector<8x32xf32>
    %44 = arith.mulf %39, %41 : vector<8x32xf32>
    %45 = arith.addf %43, %44 : vector<8x32xf32>
    %46 = math.tanh %45 : vector<8x32xf32>
    %47 = arith.mulf %42, %46 : vector<8x32xf32>
    %c0_19 = arith.constant 0 : index
    %c0_20 = arith.constant 0 : index
    %c0_21 = arith.constant 0 : index
    %48 = vector.load %arg10[%c0_19, %c0_20, %c0_21] : memref<1x8x32xf32, #tpu.memory_space<vmem>>, vector<1x8x32xf32>
    %49 = vector.shape_cast %48 : vector<1x8x32xf32> to vector<8x32xf32>
    %50 = vector.shape_cast %47 : vector<8x32xf32> to vector<1x8x32xf32>
    tpu.vector_store %arg10[%c0_19, %c0_20, %c0_21], %50 {strides = array<i32>} : memref<1x8x32xf32, #tpu.memory_space<vmem>>, vector<1x8x32xf32>,
    %c0_22 = arith.constant 0 : index
    %c0_23 = arith.constant 0 : index
    %c0_24 = arith.constant 0 : index
    %51 = vector.load %arg11[%c0_22, %c0_23, %c0_24] : memref<1x8x32xf32, #tpu.memory_space<vmem>>, vector<1x8x32xf32>
    %52 = vector.shape_cast %51 : vector<1x8x32xf32> to vector<8x32xf32>
    %53 = vector.shape_cast %45 : vector<8x32xf32> to vector<1x8x32xf32>
    tpu.vector_store %arg11[%c0_22, %c0_23, %c0_24], %53 {strides = array<i32>} : memref<1x8x32xf32, #tpu.memory_space<vmem>>, vector<1x8x32xf32>,
    %c0_25 = arith.constant 0 : index
    %c0_26 = arith.constant 0 : index
    %54 = vector.load %arg7[%c0_25, %c0_26] : memref<32x128xf32, #tpu.memory_space<vmem>>, vector<32x128xf32>
    %cst_27 = arith.constant dense<0.000000e+00> : vector<8x128xf32>
    %55 = tpu.matmul %47, %54, %cst_27 {dimension_numbers = #tpu.dot_dimension_numbers<[1], [0], [0], [1], [0, 0, 1, 1], [], []>} : vector<8x32xf32>, vector<32x128xf32>, vector<8x128xf32> -> vector<8x128xf32>
    %c0_28 = arith.constant 0 : index
    %c0_29 = arith.constant 0 : index
    %56 = vector.load %arg8[%c0_28, %c0_29] : memref<1x128xf32, #tpu.memory_space<vmem>>, vector<1x128xf32>
    %57 = vector.broadcast %56 : vector<1x128xf32> to vector<8x128xf32>
    %58 = arith.addf %55, %57 : vector<8x128xf32>
    %c0_30 = arith.constant 0 : index
    %c0_31 = arith.constant 0 : index
    %59 = vector.load %arg9[%c0_30, %c0_31] : memref<8x128xf32, #tpu.memory_space<vmem>>, vector<8x128xf32>
    tpu.vector_store %arg9[%c0_30, %c0_31], %58 {strides = array<i32>} : memref<8x128xf32, #tpu.memory_space<vmem>>, vector<8x128xf32>,
    return
  }
  func.func @transform_0(%arg0: i32) -> (i32, i32) {
    %c0_i32 = arith.constant 0 : i32
    %c0_i32_0 = arith.constant 0 : i32
    %c0_i32_1 = arith.constant 0 : i32
    return %c0_i32, %c0_i32_0 : i32, i32
  }
  func.func @transform_1(%arg0: i32) -> (i32, i32) {
    %c0_i32 = arith.constant 0 : i32
    %c0_i32_0 = arith.constant 0 : i32
    %c0_i32_1 = arith.constant 0 : i32
    return %c0_i32, %c0_i32_0 : i32, i32
  }
  func.func @transform_2(%arg0: i32) -> (i32, i32, i32) {
    %c0_i32 = arith.constant 0 : i32
    %c0_i32_0 = arith.constant 0 : i32
    %c0_i32_1 = arith.constant 0 : i32
    %c0_i32_2 = arith.constant 0 : i32
    return %c0_i32, %c0_i32_0, %c0_i32_1 : i32, i32, i32
  }
  func.func @transform_3(%arg0: i32) -> (i32, i32, i32) {
    %c0_i32 = arith.constant 0 : i32
    %c0_i32_0 = arith.constant 0 : i32
    %c0_i32_1 = arith.constant 0 : i32
    %c0_i32_2 = arith.constant 0 : i32
    return %c0_i32, %c0_i32_0, %c0_i32_1 : i32, i32, i32
  }
  func.func @transform_4(%arg0: i32) -> (i32, i32) {
    %c0_i32 = arith.constant 0 : i32
    %c0_i32_0 = arith.constant 0 : i32
    %c0_i32_1 = arith.constant 0 : i32
    return %c0_i32, %c0_i32_0 : i32, i32
  }
  func.func @transform_5(%arg0: i32) -> (i32, i32) {
    %c0_i32 = arith.constant 0 : i32
    %c0_i32_0 = arith.constant 0 : i32
    %c0_i32_1 = arith.constant 0 : i32
    return %c0_i32, %c0_i32_0 : i32, i32
  }
  func.func @transform_6(%arg0: i32) -> (i32, i32) {
    %c0_i32 = arith.constant 0 : i32
    %c0_i32_0 = arith.constant 0 : i32
    %c0_i32_1 = arith.constant 0 : i32
    return %c0_i32, %c0_i32_0 : i32, i32
  }
  func.func @transform_7(%arg0: i32) -> (i32, i32) {
    %c0_i32 = arith.constant 0 : i32
    %c0_i32_0 = arith.constant 0 : i32
    %c0_i32_1 = arith.constant 0 : i32
    return %c0_i32, %c0_i32_0 : i32, i32
  }
  func.func @transform_8(%arg0: i32) -> (i32, i32) {
    %c0_i32 = arith.constant 0 : i32
    %c0_i32_0 = arith.constant 0 : i32
    %c0_i32_1 = arith.constant 0 : i32
    return %c0_i32, %c0_i32_0 : i32, i32
  }
  func.func @transform_9(%arg0: i32) -> (i32, i32, i32) {
    %c0_i32 = arith.constant 0 : i32
    %c0_i32_0 = arith.constant 0 : i32
    %c0_i32_1 = arith.constant 0 : i32
    %c0_i32_2 = arith.constant 0 : i32
    return %c0_i32, %c0_i32_0, %c0_i32_1 : i32, i32, i32
  }
  func.func @transform_10(%arg0: i32) -> (i32, i32, i32) {
    %c0_i32 = arith.constant 0 : i32
    %c0_i32_0 = arith.constant 0 : i32
    %c0_i32_1 = arith.constant 0 : i32
    %c0_i32_2 = arith.constant 0 : i32
    return %c0_i32, %c0_i32_0, %c0_i32_1 : i32, i32, i32
  }
}

</mosaic_0001>

<bundles_post_ra>
// kernel: tpu_custom_call.1
= control target key start
LH: loop header
LB: loop body
LE: loop exit
PB: predicated region body
PF: predicated region fallthrough
CT: control target
= control target key end

     0   :  { %16 = vsyncpa [#allocation3], 0  ;;  %s833_s0 = inlined_call_operand.vmem [shape: s32[8,1], index: 0, kind: input, shape index: {}]   ;;  %s834_s1 = inlined_call_operand.hbm [shape: f32[128,384], index: 1, kind: input, shape index: {}]   ;;  %s835_s2 = inlined_call_operand.vmem [shape: f32[1,8,32], index: 2, kind: input, shape index: {}]   ;;  %s836_s3 = inlined_call_operand.hbm [shape: f32[1,8,32], index: 3, kind: input, shape index: {}]   ;;  %s837_s4 = inlined_call_operand.hbm [shape: f32[512,128], index: 4, kind: input, shape index: {}]   ;;  %s838_s5 = inlined_call_operand.vmem [shape: f32[1,128], index: 5, kind: input, shape index: {}]   ;;  %s839_s6 = inlined_call_operand.hbm [shape: f32[32,128], index: 6, kind: input, shape index: {}]   ;;  %s840_s7 = inlined_call_operand.vmem [shape: f32[1,128], index: 7, kind: input, shape index: {}]   ;;  %s841_s8 = inlined_call_operand.hbm [shape: f32[8,128], index: 8, kind: output, shape index: {0}]   ;;  %s842_s9 = inlined_call_operand.hbm [shape: f32[1,8,32], index: 9, kind: output, shape index: {1}]   ;;  %s843_s10 = inlined_call_operand.hbm [shape: f32[1,8,32], index: 10, kind: output, shape index: {2}]  }
   0x1   :  { %17 = vsyncpa [#allocation6], 0 }
   0x2   :  { %18 = vsyncpa [#allocation9], 0 }
   0x3   :  { %19 = vsyncpa [#allocation4], 0  ;;  %s43_s15 = sshll.u32 %s836_s3, 4  ;;  %s44_s15 = int_to_ptr.hbm [resolvable:$true] %s43_s15 }
   0x4   :  { %20 = vsyncpa [#allocation12], 0  ;;  %s714_s16 = smov [#allocation5]   ;;  %s27_s20 = sshll.u32 %s834_s1, 4  ;;  %s28_s20 = int_to_ptr.hbm [resolvable:$true] %s27_s20 }
   0x5   :  { %s45_s17 = sshll.u32 %s714_s16, 4  ;;  %s715_s21 = smov [#allocation2]   ;;  %s46_s17 = int_to_ptr.vmem [resolvable:$true] %s45_s17 }
   0x6   :  { %48 = dma.hbm_to_vmem [thread:$0]  %s44_s15, 128, %s46_s17, [#allocation6]  }
   0x7   :  { %s29_s22 = sshll.u32 %s715_s21, 4  ;;  %s716_s23 = smov 384   ;;  %s30_s22 = int_to_ptr.vmem [resolvable:$true] %s29_s22 }
   0x8   :  { %s717_s24 = smov 24   ;;  %s53_s3 = sshll.u32 %s837_s4, 4  ;;  %s54_s3 = int_to_ptr.hbm [resolvable:$true] %s53_s3 }
   0x9   :  { %35 = dma.hbm_to_vmem [thread:$0]  %s28_s20, 6144, %s30_s22, [#allocation3], %s716_s23, %s716_s23, %s717_s24  }
   0xa   :  { %s718_s27 = smov [#allocation7]   ;;  %s68_s1 = sshll.u32 %s839_s6, 4  ;;  %s69_s1 = int_to_ptr.hbm [resolvable:$true] %s68_s1 }
   0xb   :  { %s55_s28 = sshll.u32 %s718_s27, 4  ;;  %s719_s11 = smov 128   ;;  %s56_s28 = int_to_ptr.vmem [resolvable:$true] %s55_s28 }
   0xc   :  { %s720_s12 = smov 8   ;;  %s721_s13 = smov [#allocation8]  }
   0xd   :  { %61 = dma.hbm_to_vmem [thread:$0]  %s54_s3, 8192, %s56_s28, [#allocation6], %s719_s11, %s719_s11, %s720_s12  }
   0xe   :  { %s70_s14 = sshll.u32 %s721_s13, 4  ;;  %s71_s14 = int_to_ptr.vmem [resolvable:$true] %s70_s14 }
   0xf   :  { %76 = dma.hbm_to_vmem [thread:$0]  %s69_s1, 512, %s71_s14, [#allocation9], %s719_s11, %s719_s11, %s720_s12  }
  0x10   :  { %704 = dma.done.wait [#allocation3], 6144  }
  0x11   :  { %705 = vsyncadd [#allocation3], 4294961152 }
  0x12   :  { %706 = dma.done.wait [#allocation6], 8320  }
  0x13   :  { %707 = vsyncadd [#allocation6], 4294958976 }
  0x14   :  { %708 = dma.done.wait [#allocation9], 512  }
  0x15   :  { %709 = vsyncadd [#allocation9], 4294966784  ;;  %v722_v0 = vmov 0   ;;  %v97_v1 = vld [vmem:[%s833_s0] sm:$0xff]  ;;  %v149_v2 = vld [vmem:[#allocation2 + $0x168] sm:$0xff]  ;;  %vm214_vm1 = vcmask 261120  }
  0x16   :  { %527 = vset.pattern.permute.xlu0 %v722_v0  ;;  %v150_v3 = vld [vmem:[#allocation2 + $0x170] sm:$0xff]  ;;  %152 = vmatpush.msra.mxu0 %v149_v2  ;;  %v151_v4 = vld [vmem:[#allocation2 + $0x178] sm:$0xff]  ;;  %v148_v7 = vld [vmem:[#allocation2 + $0x160] sm:$0xff]  ;;  %s724_s16 = smov 32   ;;  %s727_s19 = smov [#allocation11]  }
  0x17   :  { %99 = vperm.xlu0 %527, %v97_v1   ;;  %v146_v5 = vld [vmem:[#allocation2 + $0x150] sm:$0xff]  ;;  %v147_v6 = vld [vmem:[#allocation2 + $0x158] sm:$0xff]  ;;  %172 = vmatpush.msra.mxu1 %v150_v3  ;;  %v144_v9 = vld [vmem:[#allocation2 + $0x140] sm:$0xff]  ;;  %s469_s20 = sshll.u32 %s727_s19, 4  ;;  %s471_s23 = sshll.u32 %s842_s9, 4  ;;  %s470_s20 = int_to_ptr.vmem [resolvable:$true] %s469_s20  ;;  %s472_s23 = int_to_ptr.hbm [resolvable:$true] %s471_s23 }
  0x18   :  { %192 = vmatpush.msra.mxu2 %v151_v4  ;;  %v143_v8 = vld [vmem:[#allocation2 + $0x138] sm:$0xff]  ;;  %153 = vmatpush.msra.mxu0 %v146_v5  ;;  %v145_v10 = vld [vmem:[#allocation2 + $0x148] sm:$0xff]  ;;  %v140_v11 = vld [vmem:[#allocation2 + $0x120] sm:$0xff]  ;;  %s728_s24 = smov [#allocation13]   ;;  %s482_s27 = sshll.u32 %s843_s10, 4  ;;  %s483_s27 = int_to_ptr.hbm [resolvable:$true] %s482_s27 }
  0x19   :  { %173 = vmatpush.msra.mxu1 %v147_v6  ;;  %v141_v12 = vld [vmem:[#allocation2 + $0x128] sm:$0xff]  ;;  %v142_v13 = vld [vmem:[#allocation2 + $0x130] sm:$0xff]  ;;  %v139_v16 = vld [vmem:[#allocation2 + $0x118] sm:$0xff]  ;;  %s480_s25 = sshll.u32 %s728_s24, 4  ;;  %s729_s30 = smov [#allocation10]   ;;  %s481_s25 = int_to_ptr.vmem [resolvable:$true] %s480_s25 }
  0x1a   :  { %193 = vmatpush.msra.mxu2 %v148_v7  ;;  %154 = vmatpush.msra.mxu0 %v143_v8  ;;  %v137_v14 = vld [vmem:[#allocation2 + $0x108] sm:$0xff]  ;;  %v138_v15 = vld [vmem:[#allocation2 + $0x110] sm:$0xff]  ;;  %v135_v18 = vld [vmem:[#allocation2 + $0xf8] sm:$0xff]  ;;  %s458_s1 = sshll.u32 %s729_s30, 4  ;;  %s460_s12 = sshll.u32 %s841_s8, 4  ;;  %s459_s1 = int_to_ptr.vmem [resolvable:$true] %s458_s1  ;;  %s461_s12 = int_to_ptr.hbm [resolvable:$true] %s460_s12 }
  0x1b   :  { %174 = vmatpush.msra.mxu1 %v144_v9  ;;  %v134_v17 = vld [vmem:[#allocation2 + $0xf0] sm:$0xff]  ;;  %v136_v19 = vld [vmem:[#allocation2 + $0x100] sm:$0xff]  ;;  %v131_v20 = vld [vmem:[#allocation2 + $0xd8] sm:$0xff] }
  0x1c   :  { %194 = vmatpush.msra.mxu2 %v145_v10  ;;  %155 = vmatpush.msra.mxu0 %v140_v11  ;;  %v132_v21 = vld [vmem:[#allocation2 + $0xe0] sm:$0xff]  ;;  %v133_v22 = vld [vmem:[#allocation2 + $0xe8] sm:$0xff]  ;;  %v130_v25 = vld [vmem:[#allocation2 + $0xd0] sm:$0xff] }
  0x1d   :  { %175 = vmatpush.msra.mxu1 %v141_v12  ;;  %v128_v23 = vld [vmem:[#allocation2 + $0xc0] sm:$0xff]  ;;  %v129_v24 = vld [vmem:[#allocation2 + $0xc8] sm:$0xff]  ;;  %v126_v27 = vld [vmem:[#allocation2 + $0xb0] sm:$0xff] }
  0x1e   :  { %195 = vmatpush.msra.mxu2 %v142_v13  ;;  %156 = vmatpush.msra.mxu0 %v137_v14  ;;  %v125_v26 = vld [vmem:[#allocation2 + $0xa8] sm:$0xff]  ;;  %v127_v28 = vld [vmem:[#allocation2 + $0xb8] sm:$0xff]  ;;  %v122_v29 = vld [vmem:[#allocation2 + $0x90] sm:$0xff] }
  0x1f   :  { %176 = vmatpush.msra.mxu1 %v138_v15  ;;  %v123_v30 = vld [vmem:[#allocation2 + $0x98] sm:$0xff]  ;;  %v124_v31 = vld [vmem:[#allocation2 + $0xa0] sm:$0xff]  ;;  %v121_v34 = vld [vmem:[#allocation2 + $0x88] sm:$0xff] }
  0x20   :  { %196 = vmatpush.msra.mxu2 %v139_v16  ;;  %157 = vmatpush.msra.mxu0 %v134_v17  ;;  %v119_v32 = vld [vmem:[#allocation2 + $0x78] sm:$0xff]  ;;  %v120_v33 = vld [vmem:[#allocation2 + $0x80] sm:$0xff]  ;;  %v117_v36 = vld [vmem:[#allocation2 + $0x68] sm:$0xff] }
  0x21   :  { %177 = vmatpush.msra.mxu1 %v135_v18  ;;  %v116_v35 = vld [vmem:[#allocation2 + $0x60] sm:$0xff]  ;;  %v118_v37 = vld [vmem:[#allocation2 + $0x70] sm:$0xff]  ;;  %v113_v38 = vld [vmem:[#allocation2 + $0x48] sm:$0xff] }
  0x22   :  { %197 = vmatpush.msra.mxu2 %v136_v19  ;;  %158 = vmatpush.msra.mxu0 %v131_v20  ;;  %v114_v39 = vld [vmem:[#allocation2 + $0x50] sm:$0xff]  ;;  %v115_v40 = vld [vmem:[#allocation2 + $0x58] sm:$0xff]  ;;  %v112_v43 = vld [vmem:[#allocation2 + $0x40] sm:$0xff] }
  0x23   :  { %178 = vmatpush.msra.mxu1 %v132_v21  ;;  %v110_v41 = vld [vmem:[#allocation2 + $0x30] sm:$0xff]  ;;  %v111_v42 = vld [vmem:[#allocation2 + $0x38] sm:$0xff]  ;;  %v108_v45 = vld [vmem:[#allocation2 + $0x20] sm:$0xff] }
  0x24   :  { %198 = vmatpush.msra.mxu2 %v133_v22  ;;  %159 = vmatpush.msra.mxu0 %v128_v23  ;;  %v107_v44 = vld [vmem:[#allocation2 + $0x18] sm:$0xff]  ;;  %v109_v46 = vld [vmem:[#allocation2 + $0x28] sm:$0xff]  ;;  %v104_v47 = vld [vmem:[#allocation2] sm:$0xff] }
  0x25   :  { %179 = vmatpush.msra.mxu1 %v129_v24  ;;  %v105_v48 = vld [vmem:[#allocation2 + $0x8] sm:$0xff]  ;;  %v106_v49 = vld [vmem:[#allocation2 + $0x10] sm:$0xff]  ;;  %v231_v50 = vld [vmem:[#allocation7 + $0x78] sm:$0xff] }
  0x26   :  { %199 = vmatpush.msra.mxu2 %v130_v25  ;;  %160 = vmatpush.msra.mxu0 %v125_v26  ;;  %v247_v51 = vld [vmem:[#allocation7 + $0xf8] sm:$0xff]  ;;  %v230_v52 = vld [vmem:[#allocation7 + $0x70] sm:$0xff]  ;;  %v229_v54 = vld [vmem:[#allocation7 + $0x68] sm:$0xff] }
  0x27   :  { %180 = vmatpush.msra.mxu1 %v126_v27  ;;  %284 = vmatpush.msra.mxu3 %v231_v50  ;;  %v246_v53 = vld [vmem:[#allocation7 + $0xf0] sm:$0xff]  ;;  %v245_v55 = vld [vmem:[#allocation7 + $0xe8] sm:$0xff]  ;;  %v263_v56 = vld [vmem:[#allocation7 + $0x178] sm:$0xff] }
  0x28   :  { %200 = vmatpush.msra.mxu2 %v127_v28  ;;  %161 = vmatpush.msra.mxu0 %v122_v29  ;;  %v228_v57 = vld [vmem:[#allocation7 + $0x60] sm:$0xff]  ;;  %v279_v58 = vld [vmem:[#allocation7 + $0x1f8] sm:$0xff]  ;;  %v262_v60 = vld [vmem:[#allocation7 + $0x170] sm:$0xff] }
  0x29   :  { %181 = vmatpush.msra.mxu1 %v123_v30  ;;  %285 = vmatpush.msra.mxu3 %v230_v52  ;;  %v244_v59 = vld [vmem:[#allocation7 + $0xe0] sm:$0xff]  ;;  %v278_v61 = vld [vmem:[#allocation7 + $0x1f0] sm:$0xff]  ;;  %v261_v62 = vld [vmem:[#allocation7 + $0x168] sm:$0xff] }
  0x2a   :  { %201 = vmatpush.msra.mxu2 %v124_v31  ;;  %162 = vmatpush.msra.mxu0 %v119_v32  ;;  %v277_v63 = vld [vmem:[#allocation7 + $0x1e8] sm:$0xff]  ;;  %v227_v0 = vld [vmem:[#allocation7 + $0x58] sm:$0xff]  ;;  %v260_v2 = vld [vmem:[#allocation7 + $0x160] sm:$0xff]  ;;  %v95_v32 = vlaneseq }
  0x2b   :  { %182 = vmatpush.msra.mxu1 %v120_v33  ;;  %286 = vmatpush.msra.mxu3 %v229_v54  ;;  %v243_v1 = vld [vmem:[#allocation7 + $0xd8] sm:$0xff]  ;;  %v276_v3 = vld [vmem:[#allocation7 + $0x1e0] sm:$0xff]  ;;  %v226_v4 = vld [vmem:[#allocation7 + $0x50] sm:$0xff] }
  0x2c   :  { %202 = vmatpush.msra.mxu2 %v121_v34  ;;  %163 = vmatpush.msra.mxu0 %v116_v35  ;;  %v242_v5 = vld [vmem:[#allocation7 + $0xd0] sm:$0xff]  ;;  %v259_v6 = vld [vmem:[#allocation7 + $0x158] sm:$0xff]  ;;  %v225_v8 = vld [vmem:[#allocation7 + $0x48] sm:$0xff] }
  0x2d   :  { %183 = vmatpush.msra.mxu1 %v117_v36  ;;  %287 = vmatpush.msra.mxu3 %v228_v57  ;;  %v275_v7 = vld [vmem:[#allocation7 + $0x1d8] sm:$0xff]  ;;  %v241_v9 = vld [vmem:[#allocation7 + $0xc8] sm:$0xff]  ;;  %v258_v10 = vld [vmem:[#allocation7 + $0x150] sm:$0xff] }
  0x2e   :  { %203 = vmatpush.msra.mxu2 %v118_v37  ;;  %164 = vmatpush.msra.mxu0 %v113_v38  ;;  %v274_v11 = vld [vmem:[#allocation7 + $0x1d0] sm:$0xff]  ;;  %v224_v12 = vld [vmem:[#allocation7 + $0x40] sm:$0xff]  ;;  %v257_v14 = vld [vmem:[#allocation7 + $0x148] sm:$0xff] }
  0x2f   :  { %184 = vmatpush.msra.mxu1 %v114_v39  ;;  %288 = vmatpush.msra.mxu3 %v227_v0  ;;  %v240_v13 = vld [vmem:[#allocation7 + $0xc0] sm:$0xff]  ;;  %v273_v15 = vld [vmem:[#allocation7 + $0x1c8] sm:$0xff]  ;;  %v223_v16 = vld [vmem:[#allocation7 + $0x38] sm:$0xff]  ;;  %v96_v39 = vand.u32 127, %v95_v32 }
  0x30   :  { %204 = vmatpush.msra.mxu2 %v115_v40  ;;  %165 = vmatpush.msra.mxu0 %v110_v41  ;;  %v239_v17 = vld [vmem:[#allocation7 + $0xb8] sm:$0xff]  ;;  %v256_v18 = vld [vmem:[#allocation7 + $0x140] sm:$0xff]  ;;  %v222_v20 = vld [vmem:[#allocation7 + $0x30] sm:$0xff] }
  0x31   :  { %185 = vmatpush.msra.mxu1 %v111_v42  ;;  %289 = vmatpush.msra.mxu3 %v226_v4  ;;  %v272_v19 = vld [vmem:[#allocation7 + $0x1c0] sm:$0xff]  ;;  %v238_v21 = vld [vmem:[#allocation7 + $0xb0] sm:$0xff]  ;;  %v255_v22 = vld [vmem:[#allocation7 + $0x138] sm:$0xff]  ;;  %vm364_vm2 = vcmp.ge.s32.totalorder %v96_v39, 64  ;;  %vm365_vm3 = vcmp.lt.s32.totalorder %v96_v39, 96 }
  0x32   :  { %205 = vmatpush.msra.mxu2 %v112_v43  ;;  %166 = vmatpush.msra.mxu0 %v107_v44  ;;  %v271_v23 = vld [vmem:[#allocation7 + $0x1b8] sm:$0xff]  ;;  %v221_v24 = vld [vmem:[#allocation7 + $0x28] sm:$0xff]  ;;  %v254_v26 = vld [vmem:[#allocation7 + $0x130] sm:$0xff]  ;;  %v723_v43 = vmov 1.0  }
  0x33   :  { %186 = vmatpush.msra.mxu1 %v108_v45  ;;  %290 = vmatpush.msra.mxu3 %v225_v8  ;;  %v237_v25 = vld [vmem:[#allocation7 + $0xa8] sm:$0xff]  ;;  %v270_v27 = vld [vmem:[#allocation7 + $0x1b0] sm:$0xff]  ;;  %v220_v28 = vld [vmem:[#allocation7 + $0x20] sm:$0xff] }
  0x34   :  { %206 = vmatpush.msra.mxu2 %v109_v46  ;;  %167 = vmatpush.msra.mxu0 %v104_v47  ;;  %v236_v29 = vld [vmem:[#allocation7 + $0xa0] sm:$0xff]  ;;  %v253_v30 = vld [vmem:[#allocation7 + $0x128] sm:$0xff]  ;;  %v219_v33 = vld [vmem:[#allocation7 + $0x18] sm:$0xff] }
  0x35   :  { %187 = vmatpush.msra.mxu1 %v105_v48  ;;  %291 = vmatpush.msra.mxu3 %v224_v12  ;;  %v269_v31 = vld [vmem:[#allocation7 + $0x1a8] sm:$0xff]  ;;  %v235_v34 = vld [vmem:[#allocation7 + $0x98] sm:$0xff]  ;;  %v252_v35 = vld [vmem:[#allocation7 + $0x120] sm:$0xff] }
  0x36   :  { %207 = vmatpush.msra.mxu2 %v106_v49  ;;  %304 = vmatpush.msrb.mxu0 %v247_v51  ;;  %v268_v36 = vld [vmem:[#allocation7 + $0x1a0] sm:$0xff]  ;;  %v218_v37 = vld [vmem:[#allocation7 + $0x10] sm:$0xff]  ;;  %v217_v40 = vld [vmem:[#allocation7 + $0x8] sm:$0xff] }
  0x37   :  { %324 = vmatpush.msrb.mxu1 %v263_v56  ;;  %292 = vmatpush.msra.mxu3 %v223_v16  ;;  %v234_v38 = vld [vmem:[#allocation7 + $0x90] sm:$0xff]  ;;  %v233_v41 = vld [vmem:[#allocation7 + $0x88] sm:$0xff]  ;;  %v216_v44 = vld [vmem:[#allocation7] sm:$0xff] }
  0x38   :  { %305 = vmatpush.msrb.mxu0 %v246_v53  ;;  %344 = vmatpush.msrb.mxu2 %v279_v58  ;;  %v232_v45 = vld [vmem:[#allocation7 + $0x80] sm:$0xff]  ;;  %v251_v46 = vld [vmem:[#allocation7 + $0x118] sm:$0xff]  ;;  %v250_v48 = vld [vmem:[#allocation7 + $0x110] sm:$0xff] }
  0x39   :  { %325 = vmatpush.msrb.mxu1 %v262_v60  ;;  %293 = vmatpush.msra.mxu3 %v222_v20  ;;  %v267_v47 = vld [vmem:[#allocation7 + $0x198] sm:$0xff]  ;;  %v266_v49 = vld [vmem:[#allocation7 + $0x190] sm:$0xff]  ;;  %v249_v50 = vld [vmem:[#allocation7 + $0x108] sm:$0xff] }
  0x3a   :  { %306 = vmatpush.msrb.mxu0 %v245_v55  ;;  %345 = vmatpush.msrb.mxu2 %v278_v61  ;;  %v265_v51 = vld [vmem:[#allocation7 + $0x188] sm:$0xff]  ;;  %v248_v52 = vld [vmem:[#allocation7 + $0x100] sm:$0xff]  ;;  %v212_v54 = vld [vmem:[%s835_s2] sm:$0xff]  ;;  %s725_s2 = smov 64  }
  0x3b   :  { %326 = vmatpush.msrb.mxu1 %v261_v62  ;;  %294 = vmatpush.msra.mxu3 %v221_v24  ;;  %v264_v53 = vld [vmem:[#allocation7 + $0x180] sm:$0xff]  ;;  %v213_v55 = vld [vmem:[#allocation5] sm:$0xff]  ;;  %vm808_vm4 = vmand %vm364_vm2, %vm365_vm3 }
  0x3c   :  { %307 = vmatpush.msrb.mxu0 %v244_v59  ;;  %346 = vmatpush.msrb.mxu2 %v277_v63  ;;  %v528_v59 = vld [vmem:[%s838_s5] ss:$0 sm:$0xff]  ;;  %s726_s5 = smov 96   ;;  %v423_v32 = vld [vmem:[#allocation8 + $0x8] sm:$0xff] }
  0x3d   :  { %327 = vmatpush.msrb.mxu1 %v260_v2  ;;  %295 = vmatpush.msra.mxu3 %v220_v28 }
  0x3e   :  { %308 = vmatpush.msrb.mxu0 %v243_v1  ;;  %347 = vmatpush.msrb.mxu2 %v276_v3 }
  0x3f   :  { %328 = vmatpush.msrb.mxu1 %v259_v6  ;;  %296 = vmatpush.msra.mxu3 %v219_v33  ;;  %v422_v33 = vld [vmem:[#allocation8] sm:$0xff] }
  0x40   :  { %309 = vmatpush.msrb.mxu0 %v242_v5  ;;  %348 = vmatpush.msrb.mxu2 %v275_v7 }
  0x41   :  { %329 = vmatpush.msrb.mxu1 %v258_v10  ;;  %297 = vmatpush.msra.mxu3 %v218_v37 }
  0x42   :  { %310 = vmatpush.msrb.mxu0 %v241_v9  ;;  %349 = vmatpush.msrb.mxu2 %v274_v11 }
  0x43   :  { %330 = vmatpush.msrb.mxu1 %v257_v14  ;;  %298 = vmatpush.msra.mxu3 %v217_v40 }
  0x44   :  { %311 = vmatpush.msrb.mxu0 %v240_v13  ;;  %350 = vmatpush.msrb.mxu2 %v273_v15 }
  0x45   :  { %331 = vmatpush.msrb.mxu1 %v256_v18  ;;  %299 = vmatpush.msra.mxu3 %v216_v44 }
  0x46   :  { %312 = vmatpush.msrb.mxu0 %v239_v17  ;;  %351 = vmatpush.msrb.mxu2 %v272_v19 }
  0x47   :  { %332 = vmatpush.msrb.mxu1 %v255_v22  ;;  %392 = vrot.lane.b32.xlu1 %v213_v55, %s724_s16 }
  0x48   :  { %313 = vmatpush.msrb.mxu0 %v238_v21  ;;  %352 = vmatpush.msrb.mxu2 %v271_v23 }
  0x49   :  { %333 = vmatpush.msrb.mxu1 %v254_v26 }
  0x4a   :  { %314 = vmatpush.msrb.mxu0 %v237_v25  ;;  %353 = vmatpush.msrb.mxu2 %v270_v27 }
  0x4b   :  { %334 = vmatpush.msrb.mxu1 %v253_v30  ;;  %v425_v30 = vld [vmem:[#allocation8 + $0x18] sm:$0xff] }
  0x4c   :  { %315 = vmatpush.msrb.mxu0 %v236_v29  ;;  %354 = vmatpush.msrb.mxu2 %v269_v31  ;;  %v424_v31 = vld [vmem:[#allocation8 + $0x10] sm:$0xff] }
  0x4d   :  { %335 = vmatpush.msrb.mxu1 %v252_v35  ;;  %444 = vmatpush.msrb.mxu3 %v425_v30 }
  0x4e   :  { %316 = vmatpush.msrb.mxu0 %v235_v34  ;;  %355 = vmatpush.msrb.mxu2 %v268_v36 }
  0x4f   :  { %336 = vmatpush.msrb.mxu1 %v251_v46  ;;  %445 = vmatpush.msrb.mxu3 %v424_v31 }
  0x50   :  { %317 = vmatpush.msrb.mxu0 %v234_v38  ;;  %356 = vmatpush.msrb.mxu2 %v267_v47  ;;  %v529_v38 = vld [vmem:[%s840_s7] ss:$0 sm:$0xff] }
  0x51   :  { %337 = vmatpush.msrb.mxu1 %v250_v48  ;;  %446 = vmatpush.msrb.mxu3 %v423_v32 }
  0x52   :  { %318 = vmatpush.msrb.mxu0 %v233_v41  ;;  %357 = vmatpush.msrb.mxu2 %v266_v49 }
  0x53   :  { %338 = vmatpush.msrb.mxu1 %v249_v50  ;;  %447 = vmatpush.msrb.mxu3 %v422_v33 }
  0x54   :  { %319 = vmatpush.msrb.mxu0 %v232_v45  ;;  %358 = vmatpush.msrb.mxu2 %v265_v51 }
  0x55   :  { %339 = vmatpush.msrb.mxu1 %v248_v52 }
  0x56   :  { %359 = vmatpush.msrb.mxu2 %v264_v53 }
  0x89   :  { %v100_v42 = vpop.permute.xlu0 %99 }
  0x8a   :  { %vm101_vm0 = vcmp.eq.s32.totalorder %v96_v39, %v100_v42 }
  0x8b   :  { %504 = vmatmul.msk.f32.vlgmr.msra.gmra.mxu0 %vm101_vm0, %v723_v43  ;;  %505 = vmatmul.msk.f32.vlgmr.msra.gmra.mxu1 %vm101_vm0, %v723_v43 }
  0x8c   :  { %506 = vmatmul.msk.f32.vlgmr.msra.gmra.mxu2 %vm101_vm0, %v723_v43 }
  0x94   :  { %507 = vmatmul.msk.f32.vlgmr.msrb.gmra.mxu2 %vm214_vm1, %v212_v54 }
  0xb9   :  { %v393_v25 = vpop.permute.xlu1 %392 }
 0x108   :  { %v169_v56 = vpop.f32.mrf.mxu0  ;;  %v189_v57 = vpop.f32.mrf.mxu1 }
 0x109   :  { %300 = vmatmul.f32.vlgmr.msra.gmra.mxu3 %v169_v56  ;;  %320 = vmatmul.f32.vlgmr.msrb.gmra.mxu0 %v189_v57 }
 0x10f   :  { %v209_v58 = vpop.f32.mrf.mxu2 }
 0x110   :  { %340 = vmatmul.f32.vlgmr.msrb.gmra.mxu1 %v209_v58 }
 0x117   :  { %v361_v1 = vpop.f32.mrf.mxu2 }
 0x186   :  { %v321_v62 = vpop.f32.mrf.mxu0 }
 0x18c   :  { %v301_v60 = vpop.f32.mrf.mxu3 }
 0x18d   :  { %v302_v61 = vadd.f32 %v528_v59, %v301_v60  ;;  %v341_v0 = vpop.f32.mrf.mxu1 }
 0x18f   :  { %v322_v63 = vadd.f32 %v321_v62, %v302_v61 }
 0x191   :  { %v342_v2 = vadd.f32 %v341_v0, %v322_v63 }
 0x193   :  { %v362_v3 = vadd.f32 %v361_v1, %v342_v2 }
 0x195   :  { %v367_v5 = vmul.f32 2.0, %v362_v3 }
 0x197   :  { %v368_v6 = vsel %vm808_vm4, %v367_v5, %v362_v3 }
 0x198   :  { %v508_v7 = vmul.f32 -1.442695, %v368_v6 }
 0x19a   :  { %530 = vpow2.f32 %v508_v7 }
 0x1a0   :  { %v531_v8 = vpop.eup %530 }
 0x1a1   :  { %v372_v9 = vadd.f32 1.0, %v531_v8 }
 0x1a3   :  { %532 = vrcp.f32 %v372_v9  ;;  %v384_v13 = vand.u32 2147483648, %v372_v9  ;;  %v382_v15 = vand.u32 2147483647, %v372_v9  ;;  %vm378_vm6 = vweird.f32 %v372_v9 }
 0x1a5   :  { %v385_v17 = vor.u32 1.1754944e-38, %v384_v13  ;;  %vm383_vm8 = vcmp.eq.f32.partialorder %v382_v15, 8.507059e+37 }
 0x1a9   :  { %v533_v10 = vpop.eup %532 }
 0x1aa   :  { %v374_v11 = vmul.f32 %v533_v10, %v372_v9  ;;  %vm379_vm5 = vweird.f32 %v533_v10 }
 0x1ab   :  { %vm380_vm7 = vmor %vm378_vm6, %vm379_vm5 }
 0x1ac   :  { %v375_v12 = vsub.f32 1.0, %v374_v11 }
 0x1ae   :  { %v376_v14 = vmul.f32 %v533_v10, %v375_v12 }
 0x1b0   :  { %v377_v16 = vadd.f32 %v533_v10, %v376_v14 }
 0x1b2   :  { %v381_v18 = vsel %vm380_vm7, %v533_v10, %v377_v16 }
 0x1b3   :  { %v386_v19 = vsel %vm383_vm8, %v385_v17, %v381_v18 }
 0x1b4   :  { %v388_v20 = vmul.f32 2.0, %v386_v19 }
 0x1b6   :  { %v509_v21 = vadd.f32 -1.0, %v388_v20 }
 0x1b8   :  { %v390_v22 = vsel %vm808_vm4, %v509_v21, %v386_v19 }
 0x1b9   :  { %397 = vrot.lane.b32.xlu0 %v390_v22, %s725_s2  ;;  %v395_v26 = vmul.f32 %v393_v25, %v390_v22 }
 0x22b   :  { %v398_v23 = vpop.permute.xlu0 %397 }
 0x22c   :  { %v400_v24 = vmul.f32 %v398_v23, %v390_v22 }
 0x22e   :  { %402 = vrot.lane.b32.xlu1 %v400_v24, %s724_s16 }
 0x2a0   :  { %v403_v27 = vpop.permute.xlu1 %402 }
 0x2a1   :  { %v405_v28 = vadd.f32 %v403_v27, %v395_v26 }
 0x2a3   :  { %534 = vtanh.f32 %v405_v28  ;;  %418 = vrot.lane.b32.xlu0 %v405_v28, %s726_s5 }
 0x2a9   :  { %v535_v29 = vpop.eup %534 }
 0x2aa   :  { %408 = vrot.lane.b32.xlu2 %v535_v29, %s725_s2 }
 0x304   :  { %v409_v34 = vpop.permute.xlu2 %408 }
 0x305   :  { %v411_v35 = vmul.f32 %v409_v34, %v390_v22 }
 0x307   :  { %413 = vrot.lane.b32.xlu2 %v411_v35, %s724_s16 }
 0x315   :  { %v419_v36 = vpop.permute.xlu0 %418 }
 0x316   :  { %421 = vst.msk [vmem:[#allocation13] sm:$0xff] %vm214_vm1, %v419_v36 }
 0x361   :  { %v414_v37 = vpop.permute.xlu2 %413 }
 0x362   :  { %416 = vst.msk [vmem:[#allocation11] sm:$0xff] %vm214_vm1, %v414_v37  ;;  %510 = vmatmul.msk.f32.vlgmr.msrb.gmra.mxu3 %vm214_vm1, %v414_v37 }
 0x363   :  { %474 = dma.vmem_to_hbm [thread:$0]  %s470_s20, 128, %s472_s23, [#allocation12]  }
 0x364   :  { %485 = dma.vmem_to_hbm [thread:$0]  %s481_s25, 128, %s483_s27, [#allocation12]  }
 0x3e5   :  { %v449_v39 = vpop.f32.mrf.mxu3 }
 0x3e6   :  { %v450_v40 = vadd.f32 %v529_v38, %v449_v39 }
 0x3e8   :  { %452 = vst [vmem:[#allocation10] sm:$0xff] %v450_v40 }
 0x3e9   :  { %463 = dma.vmem_to_hbm [thread:$0]  %s459_s1, 128, %s461_s12, [#allocation4]  }
 0x3ea   :  { %710 = dma.done.wait [#allocation4], 128  }
 0x3eb   :  { %711 = vsyncadd [#allocation4], 4294967168 }
 0x3ec   :  { %712 = dma.done.wait [#allocation12], 256  }
 0x3ed   :  { %713 = vsyncadd [#allocation12], 4294967040 }
 0x3ee   :  { %498 = vsyncpa [#allocation3], 1 }
 0x3ef   :  { %499 = vsyncpa [#allocation6], 1 }
 0x3f0   :  { %500 = vsyncpa [#allocation9], 1 }
 0x3f1   :  { %501 = vsyncpa [#allocation4], 1 }
 0x3f2   :  { %502 = vsyncpa [#allocation12], 1 }

</bundles_post_ra>
